<compile_context>
chip_gen: v7x
topology: tpu7x:2x2x1
jax: 0.10.0
libtpu: 0.0.40
codegen_flags: <defaults>
</compile_context>

<pallas_src>
import functools

import jax
import jax.numpy as jnp
from jax.experimental import pallas as pl
from jax.experimental.pallas import tpu as pltpu


_VMEM_LIMIT_BYTES = 48 * 1024 * 1024   # safe on v5e/v6e (128 MiB) and v7x (64 MiB)


def _pick_tile(dim, base, cap):
    """Largest multiple of `base` that divides `dim` and is <= cap; else `dim` itself."""
    k = (min(cap, dim) // base) * base
    while k >= base:
        if dim % k == 0:
            return k
        k -= base
    return dim


# ----------------------------- Pallas kernels ------------------------------ #

def _stats_kernel(x_ref, sb_ref, sum_ref, sq_ref, *, n_total):
    """Accumulate per-channel sum / sum-of-squares over a (TN, C, THW) tile.

    Grid = (N/TN, HW/THW), both reduction ("arbitrary") axes.  Finalize on the
    last step: scale = rsqrt(var + 1e-5), bias = -mean * scale.
    """
    ni, hi = pl.program_id(0), pl.program_id(1)
    is_first = jnp.logical_and(ni == 0, hi == 0)
    is_last = jnp.logical_and(ni == pl.num_programs(0) - 1,
                              hi == pl.num_programs(1) - 1)

    @pl.when(is_first)
    def _():
        sum_ref[...] = jnp.zeros_like(sum_ref)
        sq_ref[...] = jnp.zeros_like(sq_ref)

    x = x_ref[...].astype(jnp.float32)                    # (TN, C, THW)
    ps = jnp.sum(x, axis=2, keepdims=True)                # lane reduce -> (TN, C, 1)
    ps = jnp.sum(ps, axis=0, keepdims=True)               # (1, C, 1)
    pq = jnp.sum(x * x, axis=2, keepdims=True)
    pq = jnp.sum(pq, axis=0, keepdims=True)
    sum_ref[...] += ps
    sq_ref[...] += pq

    @pl.when(is_last)
    def _():
        # TODO(synk): single-pass E[x^2]-E[x]^2 in f32 can cancel if |mean| >> std.
        mean = sum_ref[...] * (1.0 / n_total)              # (1, C, 1)
        var = (sq_ref[...] - n_total * mean * mean) * (1.0 / (n_total - 1.0))
        inv_std = jax.lax.rsqrt(var + 1e-5)                # EUP, one op
        sb_ref[...] = jnp.concatenate([inv_std, -mean * inv_std], axis=0)  # (2, C, 1)


def _affine_kernel(x_ref, s_ref, b_ref, o_ref, *, block_rows):
    """out = x * scale_row + bias_row on a (TR, THW) lane-dense tile.

    s_ref / b_ref hold the full (N*C, 1) tables resident in VMEM; slice the
    rows belonging to this tile in-kernel (no per-step narrow DMA).
    """
    i = pl.program_id(0)
    r0 = pl.multiple_of(i * block_rows, block_rows)
    s = s_ref[pl.ds(r0, block_rows), :]                    # (TR, 1) f32
    b = b_ref[pl.ds(r0, block_rows), :]
    x = x_ref[...].astype(jnp.float32)                     # (TR, THW)
    o_ref[...] = (x * s + b).astype(o_ref.dtype)


# ------------------------------ JAX wrappers -------------------------------- #

def compute_actnorm_stats(x_nchw):
    """Per-channel (scale, bias) from x over dims (N, H, W), computed in Pallas."""
    N, C, H, W = x_nchw.shape
    HW = H * W
    x3 = x_nchw.reshape(N, C, HW)                          # contiguous view, no transpose

    thw = _pick_tile(HW, 128, 2048)                        # HW on the lane axis
    tn_cap = max(1, min(256, (4 << 20) // max(1, C * thw * 4)))
    tn = _pick_tile(N, 1, tn_cap)

    kernel = functools.partial(_stats_kernel, n_total=float(N * HW))
    sb = pl.pallas_call(
        kernel,
        out_shape=jax.ShapeDtypeStruct((2, C, 1), jnp.float32),
        grid=(N // tn, HW // thw),
        in_specs=[pl.BlockSpec((tn, C, thw), lambda ni, hi: (ni, 0, hi))],
        out_specs=pl.BlockSpec((2, C, 1), lambda ni, hi: (0, 0, 0)),
        scratch_shapes=[pltpu.VMEM((1, C, 1), jnp.float32),
                        pltpu.VMEM((1, C, 1), jnp.float32)],
        compiler_params=pltpu.CompilerParams(
            dimension_semantics=("arbitrary", "arbitrary"),
            vmem_limit_bytes=_VMEM_LIMIT_BYTES),
    )(x3)
    return sb[0, :, 0], sb[1, :, 0]                        # scale (C,), bias (C,)


def apply_conditional_affine(x_nchw, scale_nc, bias_nc):
    """out = x * scale[:, :, None, None] + bias[:, :, None, None] (Pallas elementwise)."""
    N, C, H, W = x_nchw.shape
    HW = H * W
    NC = N * C
    x2 = x_nchw.reshape(NC, HW)
    s2 = scale_nc.reshape(NC, 1).astype(jnp.float32)       # keep f32 like PyTorch weights
    b2 = bias_nc.reshape(NC, 1).astype(jnp.float32)

    thw = _pick_tile(HW, 128, 2048)                        # lane-dense tiles
    tr_cap = max(8, (4 << 20) // max(1, thw * 4))          # ~4 MiB per x tile
    tr = _pick_tile(NC, 8, tr_cap)

    kernel = functools.partial(_affine_kernel, block_rows=tr)
    out2 = pl.pallas_call(
        kernel,
        out_shape=jax.ShapeDtypeStruct((NC, HW), x_nchw.dtype),
        grid=(NC // tr, HW // thw),
        in_specs=[
            pl.BlockSpec((tr, thw), lambda i, j: (i, j)),
            pl.BlockSpec((NC, 1), lambda i, j: (0, 0)),    # resident for whole grid
            pl.BlockSpec((NC, 1), lambda i, j: (0, 0)),
        ],
        out_specs=pl.BlockSpec((tr, thw), lambda i, j: (i, j)),
        compiler_params=pltpu.CompilerParams(
            dimension_semantics=("parallel", "parallel"),  # megacore sharding on v7x
            vmem_limit_bytes=_VMEM_LIMIT_BYTES),
    )(x2, s2, b2)
    return out2.reshape(N, C, H, W)


def conditional_actnorm_forward(x, y, embed_weight, num_features, initialized):
    """Mirrors ConditionalActNorm.forward.

    Returns (out, new_embed_weight, new_initialized_flag).
    embed_weight: (num_classes, 2 * num_features)
    """
    C = num_features
    if not initialized:
        scale_init, bias_init = compute_actnorm_stats(x)          # Pallas reduction kernel
        num_classes = embed_weight.shape[0]
        new_weight = jnp.concatenate(
            [jnp.tile(scale_init[None, :], (num_classes, 1)),
             jnp.tile(bias_init[None, :], (num_classes, 1))],
            axis=1,
        ).astype(embed_weight.dtype)
        return conditional_actnorm_forward(x, y, new_weight, C, True)[0], new_weight, True
    else:
        gathered = embed_weight[y]                                 # embedding lookup (glue)
        scale = gathered[:, :C]
        bias = gathered[:, C:]
        out = apply_conditional_affine(x, scale, bias)             # Pallas elementwise kernel
        return out, embed_weight, True


# ----------------------------------- main ----------------------------------- #

if __name__ == "__main__":
    key = jax.random.PRNGKey(0)
    kx, ky = jax.random.split(key)

    N, C, H, W = 2, 4, 16, 16
    num_classes = 10

    x = jax.random.normal(kx, (N, C, H, W), dtype=jnp.float32) * 2.0 + 0.5
    y = jax.random.randint(ky, (N,), 0, num_classes, dtype=jnp.int32)

    # nn.Embedding(num_classes, 2*C) with weight zero-initialized (as in __init__).
    embed_weight = jnp.zeros((num_classes, 2 * C), dtype=jnp.float32)

    out, new_weight, initialized = conditional_actnorm_forward(
        x, y, embed_weight, num_features=C, initialized=False)
    out = jax.block_until_ready(out)

    # Pure-JAX reference of the PyTorch forward (first call, data-dependent init).
    m = jnp.mean(x, axis=(0, 2, 3))
    v = jnp.var(x, axis=(0, 2, 3), ddof=1)           # torch.var is unbiased by default
    std = jnp.sqrt(v + 1e-5)
    ref = x * (1.0 / std)[None, :, None, None] + (-m / std)[None, :, None, None]

    assert out.shape == (N, C, H, W)
    assert jnp.allclose(out, ref, atol=1e-4, rtol=1e-4), "mismatch vs reference"
    assert initialized is True

    # Also check the weights written back during init match scale/bias repeated per class.
    ref_w = jnp.concatenate([jnp.tile((1.0 / std)[None, :], (num_classes, 1)),
                             jnp.tile((-m / std)[None, :], (num_classes, 1))], axis=1)
    assert jnp.allclose(new_weight, ref_w, atol=1e-4, rtol=1e-4), "weight mismatch"

    print("KERNEL_OK")
</pallas_src>

<mosaic_0001>
module attributes {stable_mosaic.version = 11 : i64} {
  func.func @_stats_kernel(%arg0: i32, %arg1: i32, %arg2: memref<2x4x256xf32, #tpu.memory_space<vmem>>, %arg3: memref<2x4x1xf32, #tpu.memory_space<vmem>>, %arg4: memref<1x4x1xf32, #tpu.memory_space<vmem>>, %arg5: memref<1x4x1xf32, #tpu.memory_space<vmem>>) attributes {dimension_semantics = [#tpu.dimension_semantics<arbitrary>, #tpu.dimension_semantics<arbitrary>], iteration_bounds = array<i64: 1, 1>, scalar_prefetch = 0 : i64, scratch_operands = 2 : i64, tpu.core_type = #tpu.core_type<tc>, window_params = [{transform_indices = @transform_0, window_bounds = array<i64: 2, 4, 256>}, {pipeline_mode = #tpu.pipeline_mode<synchronous>, transform_indices = @transform_1, window_bounds = array<i64: 2, 4, 1>}]} {
    %c0_i32 = arith.constant 0 : i32
    %0 = arith.cmpi eq, %arg0, %c0_i32 : i32
    %c0_i32_0 = arith.constant 0 : i32
    %1 = arith.cmpi eq, %arg1, %c0_i32_0 : i32
    %2 = arith.andi %0, %1 : i1
    %c0_i32_1 = arith.constant 0 : i32
    %3 = arith.cmpi eq, %arg0, %c0_i32_1 : i32
    %c0_i32_2 = arith.constant 0 : i32
    %4 = arith.cmpi eq, %arg1, %c0_i32_2 : i32
    %5 = arith.andi %3, %4 : i1
    %6 = arith.extui %2 : i1 to i32
    %c0_i32_3 = arith.constant 0 : i32
    %7 = arith.cmpi ne, %6, %c0_i32_3 : i32
    scf.if %7 {
      %cst_22 = arith.constant 0.000000e+00 : f32
      %26 = vector.broadcast %cst_22 : f32 to vector<1x4x1xf32>
      %c0_23 = arith.constant 0 : index
      %c0_24 = arith.constant 0 : index
      %c0_25 = arith.constant 0 : index
      %27 = vector.load %arg4[%c0_23, %c0_24, %c0_25] : memref<1x4x1xf32, #tpu.memory_space<vmem>>, vector<1x4x1xf32>
      tpu.vector_store %arg4[%c0_23, %c0_24, %c0_25], %26 {strides = array<i32>} : memref<1x4x1xf32, #tpu.memory_space<vmem>>, vector<1x4x1xf32>,
      %cst_26 = arith.constant 0.000000e+00 : f32
      %28 = vector.broadcast %cst_26 : f32 to vector<1x4x1xf32>
      %c0_27 = arith.constant 0 : index
      %c0_28 = arith.constant 0 : index
      %c0_29 = arith.constant 0 : index
      %29 = vector.load %arg5[%c0_27, %c0_28, %c0_29] : memref<1x4x1xf32, #tpu.memory_space<vmem>>, vector<1x4x1xf32>
      tpu.vector_store %arg5[%c0_27, %c0_28, %c0_29], %28 {strides = array<i32>} : memref<1x4x1xf32, #tpu.memory_space<vmem>>, vector<1x4x1xf32>,
    } else {
    }
    %c0 = arith.constant 0 : index
    %c0_4 = arith.constant 0 : index
    %c0_5 = arith.constant 0 : index
    %8 = vector.load %arg2[%c0, %c0_4, %c0_5] : memref<2x4x256xf32, #tpu.memory_space<vmem>>, vector<2x4x256xf32>
    %cst = arith.constant dense<0.000000e+00> : vector<2x4xf32>
    %9 = vector.multi_reduction <add>, %8, %cst [2] : vector<2x4x256xf32> to vector<2x4xf32>
    %10 = vector.shape_cast %9 : vector<2x4xf32> to vector<2x4x1xf32>
    %cst_6 = arith.constant dense<0.000000e+00> : vector<4x1xf32>
    %11 = vector.multi_reduction <add>, %10, %cst_6 [0] : vector<2x4x1xf32> to vector<4x1xf32>
    %12 = vector.shape_cast %11 : vector<4x1xf32> to vector<1x4x1xf32>
    %13 = arith.mulf %8, %8 : vector<2x4x256xf32>
    %cst_7 = arith.constant dense<0.000000e+00> : vector<2x4xf32>
    %14 = vector.multi_reduction <add>, %13, %cst_7 [2] : vector<2x4x256xf32> to vector<2x4xf32>
    %15 = vector.shape_cast %14 : vector<2x4xf32> to vector<2x4x1xf32>
    %cst_8 = arith.constant dense<0.000000e+00> : vector<4x1xf32>
    %16 = vector.multi_reduction <add>, %15, %cst_8 [0] : vector<2x4x1xf32> to vector<4x1xf32>
    %17 = vector.shape_cast %16 : vector<4x1xf32> to vector<1x4x1xf32>
    %c0_9 = arith.constant 0 : index
    %c0_10 = arith.constant 0 : index
    %c0_11 = arith.constant 0 : index
    %18 = vector.load %arg4[%c0_9, %c0_10, %c0_11] : memref<1x4x1xf32, #tpu.memory_space<vmem>>, vector<1x4x1xf32>
    %19 = arith.addf %18, %12 : vector<1x4x1xf32>
    %c0_12 = arith.constant 0 : index
    %c0_13 = arith.constant 0 : index
    %c0_14 = arith.constant 0 : index
    %20 = vector.load %arg4[%c0_12, %c0_13, %c0_14] : memref<1x4x1xf32, #tpu.memory_space<vmem>>, vector<1x4x1xf32>
    tpu.vector_store %arg4[%c0_12, %c0_13, %c0_14], %19 {strides = array<i32>} : memref<1x4x1xf32, #tpu.memory_space<vmem>>, vector<1x4x1xf32>,
    %c0_15 = arith.constant 0 : index
    %c0_16 = arith.constant 0 : index
    %c0_17 = arith.constant 0 : index
    %21 = vector.load %arg5[%c0_15, %c0_16, %c0_17] : memref<1x4x1xf32, #tpu.memory_space<vmem>>, vector<1x4x1xf32>
    %22 = arith.addf %21, %17 : vector<1x4x1xf32>
    %c0_18 = arith.constant 0 : index
    %c0_19 = arith.constant 0 : index
    %c0_20 = arith.constant 0 : index
    %23 = vector.load %arg5[%c0_18, %c0_19, %c0_20] : memref<1x4x1xf32, #tpu.memory_space<vmem>>, vector<1x4x1xf32>
    tpu.vector_store %arg5[%c0_18, %c0_19, %c0_20], %22 {strides = array<i32>} : memref<1x4x1xf32, #tpu.memory_space<vmem>>, vector<1x4x1xf32>,
    %24 = arith.extui %5 : i1 to i32
    %c0_i32_21 = arith.constant 0 : i32
    %25 = arith.cmpi ne, %24, %c0_i32_21 : i32
    scf.if %25 {
      %c0_22 = arith.constant 0 : index
      %c0_23 = arith.constant 0 : index
      %c0_24 = arith.constant 0 : index
      %26 = vector.load %arg4[%c0_22, %c0_23, %c0_24] : memref<1x4x1xf32, #tpu.memory_space<vmem>>, vector<1x4x1xf32>
      %cst_25 = arith.constant 0.001953125 : f32
      %27 = vector.broadcast %cst_25 : f32 to vector<1x4x1xf32>
      %28 = arith.mulf %26, %27 : vector<1x4x1xf32>
      %c0_26 = arith.constant 0 : index
      %c0_27 = arith.constant 0 : index
      %c0_28 = arith.constant 0 : index
      %29 = vector.load %arg5[%c0_26, %c0_27, %c0_28] : memref<1x4x1xf32, #tpu.memory_space<vmem>>, vector<1x4x1xf32>
      %cst_29 = arith.constant 5.120000e+02 : f32
      %30 = vector.broadcast %cst_29 : f32 to vector<1x4x1xf32>
      %31 = arith.mulf %30, %28 : vector<1x4x1xf32>
      %32 = arith.mulf %31, %28 : vector<1x4x1xf32>
      %33 = arith.subf %29, %32 : vector<1x4x1xf32>
      %cst_30 = arith.constant 0.00195694715 : f32
      %34 = vector.broadcast %cst_30 : f32 to vector<1x4x1xf32>
      %35 = arith.mulf %33, %34 : vector<1x4x1xf32>
      %cst_31 = arith.constant 9.99999974E-6 : f32
      %36 = vector.broadcast %cst_31 : f32 to vector<1x4x1xf32>
      %37 = arith.addf %35, %36 : vector<1x4x1xf32>
      %38 = math.rsqrt %37 : vector<1x4x1xf32>
      %cst_32 = arith.constant 0.000000e+00 : f32
      %39 = vector.broadcast %cst_32 : f32 to vector<1x4x1xf32>
      %40 = arith.subf %39, %28 : vector<1x4x1xf32>
      %41 = arith.mulf %40, %38 : vector<1x4x1xf32>
      %42 = tpu.concatenate %38, %41 in 0 : vector<1x4x1xf32>, vector<1x4x1xf32> -> vector<2x4x1xf32>
      %c0_33 = arith.constant 0 : index
      %c0_34 = arith.constant 0 : index
      %c0_35 = arith.constant 0 : index
      %43 = vector.load %arg3[%c0_33, %c0_34, %c0_35] : memref<2x4x1xf32, #tpu.memory_space<vmem>>, vector<2x4x1xf32>
      tpu.vector_store %arg3[%c0_33, %c0_34, %c0_35], %42 {strides = array<i32>} : memref<2x4x1xf32, #tpu.memory_space<vmem>>, vector<2x4x1xf32>,
    } else {
    }
    return
  }
  func.func @transform_0(%arg0: i32, %arg1: i32) -> (i32, i32, i32) {
    %c0_i32 = arith.constant 0 : i32
    %c0_i32_0 = arith.constant 0 : i32
    return %arg0, %c0_i32, %arg1 : i32, i32, i32
  }
  func.func @transform_1(%arg0: i32, %arg1: i32) -> (i32, i32, i32) {
    %c0_i32 = arith.constant 0 : i32
    %c0_i32_0 = arith.constant 0 : i32
    %c0_i32_1 = arith.constant 0 : i32
    %c0_i32_2 = arith.constant 0 : i32
    return %c0_i32, %c0_i32_0, %c0_i32_1 : i32, i32, i32
  }
}

</mosaic_0001>

<bundles_post_ra>
// kernel: tpu_custom_call.1
= control target key start
LH: loop header
LB: loop body
LE: loop exit
PB: predicated region body
PF: predicated region fallthrough
CT: control target
= control target key end

     0   :  { %6 = vsyncpa [#allocation5], 0  ;;  %s133_s6 = smov [#allocation4]   ;;  %s183_s0 = inlined_call_operand.hbm [shape: f32[2,4,256], index: 0, kind: input, shape index: {}]   ;;  %s184_s1 = inlined_call_operand.vmem [shape: f32[2,4,1], index: 1, kind: output, shape index: {}]  }
   0x1   :  { %s12_s7 = sshll.u32 %s133_s6, 4  ;;  %s109_s10 = scalar_lea.hbm %s183_s0, 256  ;;  %s13_s7 = int_to_ptr.vmem [resolvable:$true] %s12_s7 }
   0x2   :  { %p110_p0 = scmp.ne.s32.totalorder %s183_s0, %s109_s10  ;;  %p113_p1 = scmp.lt.u32.totalorder %s109_s10, %s183_s0 }
   0x4   :  { %p115_p2 = pnand %p113_p1, %p110_p0 }
   0x6   :  { %118 = shalt.err (!%p115_p2)
}
   0x7   :  { %s119_s15 = scalar_lea.vmem %s13_s7, 256  ;;  %p124_p4 = scmp.lt.s32.totalorder %s13_s7, %s13_s7 }
   0x8   :  { %p120_p3 = scmp.ne.s32.totalorder %s13_s7, %s119_s15  ;;  %p125_p5 = scmp.lt.s32.totalorder %s119_s15, %s119_s15 }
   0xa   :  { %p126_p6 = por %p125_p5, %p124_p4 }
   0xc   :  { %p127_p7 = pnand %p126_p6, %p120_p3 }
   0xe   :  { %130 = shalt.err (!%p127_p7)
}
   0xf   :  { %s134_s16 = smov 128   ;;  %s135_s17 = smov 8  }
  0x10   :  { %18 = dma.hbm_to_vmem [thread:$0]  %s183_s0, 256, %s13_s7, [#allocation5], %s134_s16, %s134_s16, %s135_s17  }
  0x11   :  { %131 = dma.done.wait [#allocation5], 256  }
  0x12   :  { %132 = vsyncadd [#allocation5], 4294967040  ;;  %vm39_vm0 = vcmask 1043456   ;;  %v31_v0 = vld [vmem:[#allocation4] sm:$0xff]  ;;  %v32_v1 = vld [vmem:[#allocation4 + $0x8] sm:$0xff]  ;;  %vm28_vm1 = vcmask 3072  }
  0x13   :  { %v35_v2 = vcombine.high %v31_v0, %v31_v0  ;;  %v40_v3 = vsel %vm39_vm0, %v31_v0, 0.0  ;;  %v53_v4 = vmul.f32 %v31_v0, %v31_v0  ;;  %v36_v5 = vcombine.high %v32_v1, %v32_v1 }
  0x14   :  { %v45_v6 = vsel %vm39_vm0, %v32_v1, 0.0  ;;  %v54_v7 = vmul.f32 %v32_v1, %v32_v1  ;;  %v136_v20 = vmov 0.0  }
  0x15   :  { %v41_v8 = vsel %vm39_vm0, %v35_v2, 0.0  ;;  %v57_v9 = vcombine.high %v53_v4, %v53_v4  ;;  %v61_v10 = vsel %vm39_vm0, %v53_v4, 0.0  ;;  %v46_v11 = vsel %vm39_vm0, %v36_v5, 0.0  ;;  %29 = vst.msk [vmem:[#allocation2] sm:$0xf] %vm28_vm1, %v136_v20 }
  0x16   :  { %v42_v12 = vadd.f32 %v41_v8, %v40_v3  ;;  %v58_v13 = vcombine.high %v54_v7, %v54_v7  ;;  %v66_v15 = vsel %vm39_vm0, %v54_v7, 0.0  ;;  %v47_v17 = vadd.f32 %v46_v11, %v45_v6  ;;  %30 = vst.msk [vmem:[#allocation3] sm:$0xf] %vm28_vm1, %v136_v20 }
  0x17   :  { %v62_v14 = vsel %vm39_vm0, %v57_v9, 0.0 }
  0x18   :  { %43 = vadd.xlane.f32.xlu0 %v42_v12  ;;  %v63_v16 = vadd.f32 %v62_v14, %v61_v10  ;;  %v67_v18 = vsel %vm39_vm0, %v58_v13, 0.0 }
  0x19   :  { %v68_v19 = vadd.f32 %v67_v18, %v66_v15 }
  0x1a   :  { %64 = vadd.xlane.f32.xlu1 %v63_v16 }
  0x1c   :  { %48 = vadd.xlane.f32.xlu0 %v47_v17  ;;  %v74_v27 = vld [vmem:[#allocation2] sm:$0xf] }
  0x1d   :  { %v78_v31 = vld [vmem:[#allocation3] sm:$0xf] }
  0x1e   :  { %69 = vadd.xlane.f32.xlu1 %v68_v19 }
  0xa5   :  { %v44_v21 = vpop.xlane.xlu0 %43 }
  0xa6   :  { %v50_v24 = vsel %vm39_vm0, %v44_v21, 0.0 }
  0xa7   :  { %v65_v22 = vpop.xlane.xlu1 %64 }
  0xa8   :  { %v71_v25 = vsel %vm39_vm0, %v65_v22, 0.0 }
  0xa9   :  { %v49_v23 = vpop.xlane.xlu0 %48 }
  0xaa   :  { %v51_v26 = vsel %vm39_vm0, %v49_v23, 0.0 }
  0xab   :  { %v52_v28 = vadd.f32 %v51_v26, %v50_v24  ;;  %v70_v29 = vpop.xlane.xlu1 %69 }
  0xac   :  { %v72_v30 = vsel %vm39_vm0, %v70_v29, 0.0 }
  0xad   :  { %v75_v32 = vadd.f32 %v74_v27, %v52_v28  ;;  %v73_v33 = vadd.f32 %v72_v30, %v71_v25 }
  0xaf   :  { %77 = vst.msk [vmem:[#allocation2] sm:$0xf] %vm28_vm1, %v75_v32  ;;  %v79_v34 = vadd.f32 %v78_v31, %v73_v33 }
  0xb1   :  { %80 = vst.msk [vmem:[#allocation3] sm:$0xf] %vm28_vm1, %v79_v34 }
  0xb6   :  { %v83_v35 = vld [vmem:[#allocation2] sm:$0xf] }
  0xb7   :  { %v84_v36 = vmul.f32 0.001953125, %v83_v35 }
  0xb8   :  { %v85_v39 = vld [vmem:[#allocation3] sm:$0xf] }
  0xb9   :  { %v86_v37 = vmul.f32 512.0, %v84_v36  ;;  %v92_v43 = vsub.f32 0.0, %v84_v36 }
  0xbb   :  { %v87_v38 = vmul.f32 %v86_v37, %v84_v36 }
  0xbd   :  { %v88_v40 = vsub.f32 %v85_v39, %v87_v38 }
  0xbf   :  { %v89_v41 = vmul.f32 0.0019569471, %v88_v40 }
  0xc1   :  { %v90_v42 = vadd.f32 1e-05, %v89_v41 }
  0xc3   :  { %107 = vrsqrt.f32 %v90_v42 }
  0xcd   :  { %v108_v44 = vpop.eup %107 }
  0xce   :  { %v93_v45 = vmul.f32 %v108_v44, %v92_v43  ;;  %94 = vst.msk [vmem:[%s184_s1] sm:$0xf] %vm28_vm1, %v108_v44 }
  0xd0   :  { %95 = vst.msk [vmem:[%s184_s1 + $0x4] sm:$0xf] %vm28_vm1, %v93_v45 }
  0xd1   :  { %100 = vsyncpa [#allocation5], 1 }

</bundles_post_ra>
